<compile_context>
chip_gen: v7x
topology: tpu7x:2x2x1
jax: 0.10.0
libtpu: 0.0.40
codegen_flags: <defaults>
</compile_context>

<pallas_src>
import jax
import jax.numpy as jnp
from jax.experimental import pallas as pl
from jax.experimental.pallas import tpu as pltpu

EPS = 1e-8


def _round_up(x, m):
    return ((x + m - 1) // m) * m


# ---------------------------------------------------------------------------
# Fused kernel: K-tiled MXU matmul + fused row-norm accumulation + scaling
# ---------------------------------------------------------------------------
def _cosine_kernel(img_ref, capT_ref, out_ref, acc_ref, ssq_i_ref, ssq_c_ref):
    k = pl.program_id(2)

    @pl.when(k == 0)
    def _():
        acc_ref[...] = jnp.zeros_like(acc_ref)
        ssq_i_ref[...] = jnp.zeros_like(ssq_i_ref)
        ssq_c_ref[...] = jnp.zeros_like(ssq_c_ref)

    a = img_ref[...]          # (tm, tk)
    b = capT_ref[...]         # (tk, tn)  -- pre-transposed: plain NN matmul
    acc_ref[...] += jnp.dot(a, b, preferred_element_type=jnp.float32)

    af = a.astype(jnp.float32)
    bf = b.astype(jnp.float32)
    # Partial sum-of-squares for the rows of img / cap covered by this tile.
    ssq_i_ref[...] += jnp.sum(af * af, axis=1, keepdims=True)   # (tm, 1)
    ssq_c_ref[...] += jnp.sum(bf * bf, axis=0, keepdims=True)   # (1, tn)

    @pl.when(k == pl.num_programs(2) - 1)
    def _():
        inv_i = 1.0 / (jnp.sqrt(ssq_i_ref[...]) + EPS)          # exact eps
        inv_c = 1.0 / (jnp.sqrt(ssq_c_ref[...]) + EPS)
        out_ref[...] = (acc_ref[...] * inv_i * inv_c).astype(out_ref.dtype)


# ---------------------------------------------------------------------------
# Tile selection: lane-dense output, per-generation VMEM budget
# ---------------------------------------------------------------------------
def _vmem_bytes(tm, tn, tk, itemsize):
    # double-buffered input tiles + double-buffered f32 output tile
    # + f32 accumulator + (lane/sublane padded) sum-of-squares scratch.
    return (2 * tm * tk * itemsize
            + 2 * tk * tn * itemsize
            + 2 * tm * tn * 4
            + tm * tn * 4
            + tm * 128 * 4
            + 8 * _round_up(tn, 128) * 4)


def _choose_tiles(n, m, d, itemsize, budget):
    tm = min(512, _round_up(max(n, 1), 8))        # sublane multiple
    tn = min(512, _round_up(max(m, 1), 128))      # lane-dense output store
    d128 = _round_up(max(d, 1), 128)
    tk_max = 2048
    if d128 <= tk_max:
        tk = d128                                  # single K step
    else:
        nk = pl.cdiv(d128, tk_max)
        tk = _round_up(pl.cdiv(d128, nk), 128)     # balanced K split

    while _vmem_bytes(tm, tn, tk, itemsize) > budget:
        if tk > 512:
            tk = _round_up(tk // 2, 128)
        elif tm > 256 and tm >= tn:
            tm = _round_up(tm // 2, 8)
        elif tn > 256:
            tn = _round_up(tn // 2, 128)
        elif tm > 8:
            tm = max(8, _round_up(tm // 2, 8))
        elif tn > 128:
            tn = 128
        elif tk > 128:
            tk = _round_up(tk // 2, 128)
        else:
            break
    return tm, tn, tk


def _vmem_budget():
    # 3/4 of physical VMEM: ~96 MiB on v5e/v6e (128 MiB), ~48 MiB on v7x (64).
    try:
        cap = int(pltpu.get_tpu_info().vmem_capacity_bytes)
    except Exception:
        cap = 64 * 1024 * 1024
    return (cap * 3) // 4


def cosine_similarity(img_embed, cap_embed, *, tm=None, tn=None, tk=None):
    """l2-normalize rows of both inputs, then img @ cap.T (Pallas TPU)."""
    n, d = img_embed.shape
    m, d2 = cap_embed.shape
    assert d == d2, "latent dims must match"

    itemsize = max(jnp.dtype(img_embed.dtype).itemsize,
                   jnp.dtype(cap_embed.dtype).itemsize)
    budget = _vmem_budget()

    a_tm, a_tn, a_tk = _choose_tiles(n, m, d, itemsize, budget)
    tm = a_tm if tm is None else tm
    tn = a_tn if tn is None else tn
    tk = a_tk if tk is None else tk
    assert tm % 8 == 0, "tm must be a multiple of 8 (sublane)"
    assert tn % 128 == 0, "tn must be a multiple of 128 (lane-dense output)"
    assert tk % 128 == 0, "tk must be a multiple of 128 (lane-dense inputs)"

    # Zero-pad so every axis divides its tile; sliced off at the end.
    n_pad = pl.cdiv(n, tm) * tm
    m_pad = pl.cdiv(m, tn) * tn
    d_pad = pl.cdiv(d, tk) * tk

    img = img_embed
    if (n_pad, d_pad) != (n, d):
        img = jnp.pad(img, ((0, n_pad - n), (0, d_pad - d)))
    capT = jnp.transpose(cap_embed)            # one-time HBM transpose (XLA)
    if (d_pad, m_pad) != (d, m):
        capT = jnp.pad(capT, ((0, d_pad - d), (0, m_pad - m)))

    grid = (n_pad // tm, m_pad // tn, d_pad // tk)

    out = pl.pallas_call(
        _cosine_kernel,
        out_shape=jax.ShapeDtypeStruct((n_pad, m_pad), jnp.float32),
        grid_spec=pltpu.PrefetchScalarGridSpec(
            num_scalar_prefetch=0,
            grid=grid,
            in_specs=[
                pl.BlockSpec((tm, tk), lambda i, j, k: (i, k)),
                pl.BlockSpec((tk, tn), lambda i, j, k: (k, j)),
            ],
            out_specs=pl.BlockSpec((tm, tn), lambda i, j, k: (i, j)),
            scratch_shapes=[
                pltpu.VMEM((tm, tn), jnp.float32),   # matmul accumulator
                pltpu.VMEM((tm, 1), jnp.float32),    # img sum-of-squares
                pltpu.VMEM((1, tn), jnp.float32),    # cap sum-of-squares
            ],
        ),
        compiler_params=pltpu.CompilerParams(
            dimension_semantics=("parallel", "parallel", "arbitrary"),
            vmem_limit_bytes=int(budget),
        ),
    )(img, capT)
    return out[:n, :m]


def _reference(img_embed, cap_embed):
    img = img_embed.astype(jnp.float32)
    cap = cap_embed.astype(jnp.float32)
    img = img / (jnp.sqrt(jnp.sum(img * img, axis=1, keepdims=True)) + EPS)
    cap = cap / (jnp.sqrt(jnp.sum(cap * cap, axis=1, keepdims=True)) + EPS)
    return img @ cap.T


if __name__ == "__main__":
    key = jax.random.PRNGKey(0)
    k_img, k_cap = jax.random.split(key)

    # Small, deliberately non-multiple shapes: 40 images, 200 captions, D=256.
    N, M, D = 40, 200, 256
    img_embed = jax.random.normal(k_img, (N, D), dtype=jnp.float32)
    cap_embed = jax.random.normal(k_cap, (M, D), dtype=jnp.float32)

    ref = _reference(img_embed, cap_embed)

    # 1) auto-selected tiles (single K step here)
    out = jax.block_until_ready(cosine_similarity(img_embed, cap_embed))
    assert out.shape == (N, M)
    assert jnp.allclose(out, ref, atol=1e-5, rtol=1e-5), "mismatch (auto tiles)"

    # 2) explicit small tiles -> exercises multi-tile grid, padding AND the
    #    K-axis accumulation path (D=256, tk=128 -> 2 K steps).
    out2 = jax.block_until_ready(
        cosine_similarity(img_embed, cap_embed, tm=16, tn=128, tk=128)
    )
    assert jnp.allclose(out2, ref, atol=1e-5, rtol=1e-5), "mismatch (16x128x128)"

    print("KERNEL_OK")
</pallas_src>

<mosaic_0001>
module attributes {stable_mosaic.version = 11 : i64} {
  func.func @_cosine_kernel(%arg0: i32, %arg1: i32, %arg2: i32, %arg3: memref<40x256xf32, #tpu.memory_space<vmem>>, %arg4: memref<256x256xf32, #tpu.memory_space<vmem>>, %arg5: memref<40x256xf32, #tpu.memory_space<vmem>>, %arg6: memref<40x256xf32, #tpu.memory_space<vmem>>, %arg7: memref<40x1xf32, #tpu.memory_space<vmem>>, %arg8: memref<1x256xf32, #tpu.memory_space<vmem>>) attributes {dimension_semantics = [#tpu.dimension_semantics<parallel>, #tpu.dimension_semantics<parallel>, #tpu.dimension_semantics<arbitrary>], iteration_bounds = array<i64: 1, 1, 1>, scalar_prefetch = 0 : i64, scratch_operands = 3 : i64, tpu.core_type = #tpu.core_type<tc>, window_params = [{transform_indices = @transform_0, window_bounds = array<i64: 40, 256>}, {transform_indices = @transform_1, window_bounds = array<i64: 256, 256>}, {transform_indices = @transform_2, window_bounds = array<i64: 40, 256>}]} {
    %c0_i32 = arith.constant 0 : i32
    %0 = arith.cmpi eq, %arg2, %c0_i32 : i32
    %1 = arith.extui %0 : i1 to i32
    %c0_i32_0 = arith.constant 0 : i32
    %2 = arith.cmpi ne, %1, %c0_i32_0 : i32
    scf.if %2 {
      %cst_20 = arith.constant 0.000000e+00 : f32
      %24 = vector.broadcast %cst_20 : f32 to vector<40x256xf32>
      %c0_21 = arith.constant 0 : index
      %c0_22 = arith.constant 0 : index
      %25 = vector.load %arg6[%c0_21, %c0_22] : memref<40x256xf32, #tpu.memory_space<vmem>>, vector<40x256xf32>
      tpu.vector_store %arg6[%c0_21, %c0_22], %24 {strides = array<i32>} : memref<40x256xf32, #tpu.memory_space<vmem>>, vector<40x256xf32>,
      %cst_23 = arith.constant 0.000000e+00 : f32
      %26 = vector.broadcast %cst_23 : f32 to vector<40x1xf32>
      %c0_24 = arith.constant 0 : index
      %c0_25 = arith.constant 0 : index
      %27 = vector.load %arg7[%c0_24, %c0_25] : memref<40x1xf32, #tpu.memory_space<vmem>>, vector<40x1xf32>
      tpu.vector_store %arg7[%c0_24, %c0_25], %26 {strides = array<i32>} : memref<40x1xf32, #tpu.memory_space<vmem>>, vector<40x1xf32>,
      %cst_26 = arith.constant 0.000000e+00 : f32
      %28 = vector.broadcast %cst_26 : f32 to vector<1x256xf32>
      %c0_27 = arith.constant 0 : index
      %c0_28 = arith.constant 0 : index
      %29 = vector.load %arg8[%c0_27, %c0_28] : memref<1x256xf32, #tpu.memory_space<vmem>>, vector<1x256xf32>
      tpu.vector_store %arg8[%c0_27, %c0_28], %28 {strides = array<i32>} : memref<1x256xf32, #tpu.memory_space<vmem>>, vector<1x256xf32>,
    } else {
    }
    %c0 = arith.constant 0 : index
    %c0_1 = arith.constant 0 : index
    %3 = vector.load %arg3[%c0, %c0_1] : memref<40x256xf32, #tpu.memory_space<vmem>>, vector<40x256xf32>
    %c0_2 = arith.constant 0 : index
    %c0_3 = arith.constant 0 : index
    %4 = vector.load %arg4[%c0_2, %c0_3] : memref<256x256xf32, #tpu.memory_space<vmem>>, vector<256x256xf32>
    %c0_4 = arith.constant 0 : index
    %c0_5 = arith.constant 0 : index
    %5 = vector.load %arg6[%c0_4, %c0_5] : memref<40x256xf32, #tpu.memory_space<vmem>>, vector<40x256xf32>
    %cst = arith.constant dense<0.000000e+00> : vector<40x256xf32>
    %6 = tpu.matmul %3, %4, %cst {dimension_numbers = #tpu.dot_dimension_numbers<[1], [0], [0], [1], [0, 0, 1, 1], [], []>} : vector<40x256xf32>, vector<256x256xf32>, vector<40x256xf32> -> vector<40x256xf32>
    %7 = arith.addf %5, %6 : vector<40x256xf32>
    %c0_6 = arith.constant 0 : index
    %c0_7 = arith.constant 0 : index
    %8 = vector.load %arg6[%c0_6, %c0_7] : memref<40x256xf32, #tpu.memory_space<vmem>>, vector<40x256xf32>
    tpu.vector_store %arg6[%c0_6, %c0_7], %7 {strides = array<i32>} : memref<40x256xf32, #tpu.memory_space<vmem>>, vector<40x256xf32>,
    %c0_8 = arith.constant 0 : index
    %c0_9 = arith.constant 0 : index
    %9 = vector.load %arg7[%c0_8, %c0_9] : memref<40x1xf32, #tpu.memory_space<vmem>>, vector<40x1xf32>
    %10 = arith.mulf %3, %3 : vector<40x256xf32>
    %cst_10 = arith.constant dense<0.000000e+00> : vector<40xf32>
    %11 = vector.multi_reduction <add>, %10, %cst_10 [1] : vector<40x256xf32> to vector<40xf32>
    %12 = vector.shape_cast %11 : vector<40xf32> to vector<40x1xf32>
    %13 = arith.addf %9, %12 : vector<40x1xf32>
    %c0_11 = arith.constant 0 : index
    %c0_12 = arith.constant 0 : index
    %14 = vector.load %arg7[%c0_11, %c0_12] : memref<40x1xf32, #tpu.memory_space<vmem>>, vector<40x1xf32>
    tpu.vector_store %arg7[%c0_11, %c0_12], %13 {strides = array<i32>} : memref<40x1xf32, #tpu.memory_space<vmem>>, vector<40x1xf32>,
    %c0_13 = arith.constant 0 : index
    %c0_14 = arith.constant 0 : index
    %15 = vector.load %arg8[%c0_13, %c0_14] : memref<1x256xf32, #tpu.memory_space<vmem>>, vector<1x256xf32>
    %16 = arith.mulf %4, %4 : vector<256x256xf32>
    %cst_15 = arith.constant dense<0.000000e+00> : vector<256xf32>
    %17 = vector.multi_reduction <add>, %16, %cst_15 [0] : vector<256x256xf32> to vector<256xf32>
    %18 = vector.shape_cast %17 : vector<256xf32> to vector<1x256xf32>
    %19 = arith.addf %15, %18 : vector<1x256xf32>
    %c0_16 = arith.constant 0 : index
    %c0_17 = arith.constant 0 : index
    %20 = vector.load %arg8[%c0_16, %c0_17] : memref<1x256xf32, #tpu.memory_space<vmem>>, vector<1x256xf32>
    tpu.vector_store %arg8[%c0_16, %c0_17], %19 {strides = array<i32>} : memref<1x256xf32, #tpu.memory_space<vmem>>, vector<1x256xf32>,
    %c0_i32_18 = arith.constant 0 : i32
    %21 = arith.cmpi eq, %arg2, %c0_i32_18 : i32
    %22 = arith.extui %21 : i1 to i32
    %c0_i32_19 = arith.constant 0 : i32
    %23 = arith.cmpi ne, %22, %c0_i32_19 : i32
    scf.if %23 {
      %c0_20 = arith.constant 0 : index
      %c0_21 = arith.constant 0 : index
      %24 = vector.load %arg7[%c0_20, %c0_21] : memref<40x1xf32, #tpu.memory_space<vmem>>, vector<40x1xf32>
      %25 = math.sqrt %24 : vector<40x1xf32>
      %cst_22 = arith.constant 9.99999993E-9 : f32
      %26 = vector.broadcast %cst_22 : f32 to vector<40x1xf32>
      %27 = arith.addf %25, %26 : vector<40x1xf32>
      %cst_23 = arith.constant 1.000000e+00 : f32
      %28 = vector.broadcast %cst_23 : f32 to vector<40x1xf32>
      %29 = arith.divf %28, %27 : vector<40x1xf32>
      %c0_24 = arith.constant 0 : index
      %c0_25 = arith.constant 0 : index
      %30 = vector.load %arg8[%c0_24, %c0_25] : memref<1x256xf32, #tpu.memory_space<vmem>>, vector<1x256xf32>
      %31 = math.sqrt %30 : vector<1x256xf32>
      %cst_26 = arith.constant 9.99999993E-9 : f32
      %32 = vector.broadcast %cst_26 : f32 to vector<1x256xf32>
      %33 = arith.addf %31, %32 : vector<1x256xf32>
      %cst_27 = arith.constant 1.000000e+00 : f32
      %34 = vector.broadcast %cst_27 : f32 to vector<1x256xf32>
      %35 = arith.divf %34, %33 : vector<1x256xf32>
      %c0_28 = arith.constant 0 : index
      %c0_29 = arith.constant 0 : index
      %36 = vector.load %arg6[%c0_28, %c0_29] : memref<40x256xf32, #tpu.memory_space<vmem>>, vector<40x256xf32>
      %37 = vector.broadcast %29 : vector<40x1xf32> to vector<40x256xf32>
      %38 = arith.mulf %36, %37 : vector<40x256xf32>
      %39 = vector.broadcast %35 : vector<1x256xf32> to vector<40x256xf32>
      %40 = arith.mulf %38, %39 : vector<40x256xf32>
      %c0_30 = arith.constant 0 : index
      %c0_31 = arith.constant 0 : index
      %41 = vector.load %arg5[%c0_30, %c0_31] : memref<40x256xf32, #tpu.memory_space<vmem>>, vector<40x256xf32>
      tpu.vector_store %arg5[%c0_30, %c0_31], %40 {strides = array<i32>} : memref<40x256xf32, #tpu.memory_space<vmem>>, vector<40x256xf32>,
    } else {
    }
    return
  }
  func.func @transform_0(%arg0: i32, %arg1: i32, %arg2: i32) -> (i32, i32) {
    %c0_i32 = arith.constant 0 : i32
    return %arg0, %arg2 : i32, i32
  }
  func.func @transform_1(%arg0: i32, %arg1: i32, %arg2: i32) -> (i32, i32) {
    %c0_i32 = arith.constant 0 : i32
    return %arg2, %arg1 : i32, i32
  }
  func.func @transform_2(%arg0: i32, %arg1: i32, %arg2: i32) -> (i32, i32) {
    %c0_i32 = arith.constant 0 : i32
    return %arg0, %arg1 : i32, i32
  }
}

</mosaic_0001>

<bundles_post_ra>
// kernel: tpu_custom_call.1
= control target key start
LH: loop header
LB: loop body
LE: loop exit
PB: predicated region body
PF: predicated region fallthrough
CT: control target
= control target key end

     0   :  { %7 = vsyncpa [#allocation6], 0  ;;  %s966_s0 = inlined_call_operand.hbm [shape: f32[40,256], index: 0, kind: input, shape index: {}]   ;;  %s967_s1 = inlined_call_operand.hbm [shape: f32[256,256], index: 1, kind: input, shape index: {}]   ;;  %s968_s2 = inlined_call_operand.hbm [shape: f32[40,256], index: 2, kind: output, shape index: {}]  }
   0x1   :  { %8 = vsyncpa [#allocation9], 0 }
   0x2   :  { %9 = vsyncpa [#allocation7], 0  ;;  %s833_s9 = smov [#allocation5]   ;;  %s761_s13 = scalar_lea.hbm %s966_s0, 1280 }
   0x3   :  { %s15_s10 = sshll.u32 %s833_s9, 4  ;;  %p762_p0 = scmp.ne.s32.totalorder %s966_s0, %s761_s13  ;;  %s16_s10 = int_to_ptr.vmem [resolvable:$true] %s15_s10 }
   0x4   :  { %p765_p1 = scmp.lt.u32.totalorder %s761_s13, %s966_s0 }
   0x6   :  { %p767_p2 = pnand %p765_p1, %p762_p0 }
   0x8   :  { %770 = shalt.err (!%p767_p2)
}
   0x9   :  { %s771_s18 = scalar_lea.vmem %s16_s10, 1280  ;;  %p776_p4 = scmp.lt.s32.totalorder %s16_s10, %s16_s10 }
   0xa   :  { %p772_p3 = scmp.ne.s32.totalorder %s16_s10, %s771_s18  ;;  %p777_p5 = scmp.lt.s32.totalorder %s771_s18, %s771_s18 }
   0xc   :  { %p778_p6 = por %p777_p5, %p776_p4 }
   0xe   :  { %p779_p7 = pnand %p778_p6, %p772_p3 }
  0x10   :  { %782 = shalt.err (!%p779_p7)
}
  0x11   :  { %s834_s19 = smov 256   ;;  %s835_s20 = smov 16  }
  0x12   :  { %21 = dma.hbm_to_vmem [thread:$0]  %s966_s0, 1280, %s16_s10, [#allocation6], %s834_s19, %s834_s19, %s835_s20  }
  0x13   :  { %s836_s23 = smov [#allocation8]   ;;  %s783_s27 = scalar_lea.hbm %s967_s1, 8192 }
  0x14   :  { %s27_s24 = sshll.u32 %s836_s23, 4  ;;  %p784_p8 = scmp.ne.s32.totalorder %s967_s1, %s783_s27  ;;  %s28_s24 = int_to_ptr.vmem [resolvable:$true] %s27_s24 }
  0x15   :  { %p787_p9 = scmp.lt.u32.totalorder %s783_s27, %s967_s1 }
  0x17   :  { %p789_p10 = pnand %p787_p9, %p784_p8 }
  0x19   :  { %792 = shalt.err (!%p789_p10)
}
  0x1a   :  { %s793_s4 = scalar_lea.vmem %s28_s24, 8192  ;;  %p798_p12 = scmp.lt.s32.totalorder %s28_s24, %s28_s24 }
  0x1b   :  { %p794_p11 = scmp.ne.s32.totalorder %s28_s24, %s793_s4  ;;  %p799_p13 = scmp.lt.s32.totalorder %s793_s4, %s793_s4 }
  0x1d   :  { %p800_p0 = por %p799_p13, %p798_p12 }
  0x1f   :  { %p801_p1 = pnand %p800_p0, %p794_p11 }
  0x21   :  { %804 = shalt.err (!%p801_p1)
}
  0x22   :  { %33 = dma.hbm_to_vmem [thread:$0]  %s967_s1, 8192, %s28_s24, [#allocation9], %s834_s19, %s834_s19, %s835_s20  }
  0x23   :  { %827 = dma.done.wait [#allocation6], 1280  }
  0x24   :  { %828 = vsyncadd [#allocation6], 4294966016 }
  0x25   :  { %829 = dma.done.wait [#allocation9], 8192  }
  0x26   :  { %830 = vsyncadd [#allocation9], 4294959104  ;;  %v60_v0 = vlaneseq  ;;  %vm54_vm0 = vcmask 7168   ;;  %v837_v1 = vmov 0.0   ;;  %v898_v3 = vld [vmem:[#allocation5 + $0x20] sm:$0xff]  ;;  %v900_v4 = vld [vmem:[#allocation5 + $0x28] sm:$0xff] }
  0x27   :  { %57 = vst.msk [vmem:[#allocation3 + $0x10] sm:$0xff] %vm54_vm0, %v837_v1  ;;  %55 = vst.msk [vmem:[#allocation3] sm:$0xff] %vm54_vm0, %v837_v1  ;;  %v902_v5 = vld [vmem:[#allocation5] sm:$0xff]  ;;  %v273_v6 = vmul.f32 %v898_v3, %v898_v3  ;;  %v274_v7 = vmul.f32 %v900_v4, %v900_v4  ;;  %v66_v8 = vld [vmem:[#allocation5 + $0x8] sm:$0xff]  ;;  %s840_s1 = smov [#allocation10]  }
  0x28   :  { %56 = vst.msk [vmem:[#allocation3 + $0x8] sm:$0xff] %vm54_vm0, %v837_v1  ;;  %58 = vst.msk [vmem:[#allocation3 + $0x18] sm:$0xff] %vm54_vm0, %v837_v1  ;;  %vm892_vm1 = vcmp.lt.s32.totalorder %v60_v0, 256  ;;  %v269_v9 = vmul.f32 %v902_v5, %v902_v5  ;;  %v910_v10 = vld [vmem:[#allocation5 + $0x30] sm:$0xff]  ;;  %v72_v11 = vld [vmem:[#allocation5 + $0x38] sm:$0xff]  ;;  %v270_v12 = vmul.f32 %v66_v8, %v66_v8  ;;  %213 = vmatprep.mubr.f32.mxu0 %v66_v8  ;;  %s618_s6 = sshll.u32 %s840_s1, 4  ;;  %s619_s6 = int_to_ptr.vmem [resolvable:$true] %s618_s6 }
  0x29   :  { %59 = vst.msk [vmem:[#allocation3 + $0x20] sm:$0xff] %vm54_vm0, %v837_v1  ;;  %v275_v13 = vmul.f32 %v910_v10, %v910_v10  ;;  %v276_v14 = vmul.f32 %v72_v11, %v72_v11  ;;  %v914_v15 = vld [vmem:[#allocation5 + $0x10] sm:$0xff]  ;;  %v916_v16 = vld [vmem:[#allocation5 + $0x18] sm:$0xff]  ;;  %v918_v17 = vld [vmem:[#allocation5 + $0x40] sm:$0xff]  ;;  %231 = vmatprep.mubr.f32.mxu1 %v72_v11  ;;  %v285_v18 = vadd.f32 %v274_v7, %v273_v6  ;;  %s805_s7 = scalar_lea.vmem %s619_s6, 1280  ;;  %p810_p3 = scmp.lt.s32.totalorder %s619_s6, %s619_s6 }
  0x2a   :  { %64 = vst.msk [vmem:[#allocation4] sm:$0x3] %vm892_vm1, %v837_v1  ;;  %v271_v19 = vmul.f32 %v914_v15, %v914_v15  ;;  %v272_v20 = vmul.f32 %v916_v16, %v916_v16  ;;  %v924_v21 = vld [vmem:[#allocation5 + $0x48] sm:$0xff]  ;;  %v76_v22 = vld [vmem:[#allocation8 + $0x8] sm:$0xff]  ;;  %v279_v24 = vadd.f32 %v270_v12, %v269_v9  ;;  %v277_v26 = vmul.f32 %v918_v17, %v918_v17  ;;  %v75_v28 = vld [vmem:[#allocation8] sm:$0xff]  ;;  %p806_p2 = scmp.ne.s32.totalorder %s619_s6, %s805_s7  ;;  %p811_p4 = scmp.lt.s32.totalorder %s805_s7, %s805_s7 }
  0x2b   :  { %v78_v23 = vld [vmem:[#allocation8 + $0x18] sm:$0xff]  ;;  %v288_v25 = vadd.f32 %v276_v14, %v275_v13  ;;  %v77_v29 = vld [vmem:[#allocation8 + $0x10] sm:$0xff]  ;;  %v80_v30 = vld [vmem:[#allocation8 + $0x28] sm:$0xff]  ;;  %286 = vadd.xlane.f32.xlu1 %v285_v18  ;;  %v278_v31 = vmul.f32 %v924_v21, %v924_v21  ;;  %v307_v32 = vmul.f32 %v76_v22, %v76_v22  ;;  %v306_v39 = vmul.f32 %v75_v28, %v75_v28 }
  0x2c   :  { %v631_v27 = vpack.c.bf16 %v78_v23, %v76_v22  ;;  %v309_v33 = vmul.f32 %v78_v23, %v78_v23  ;;  %v633_v34 = vpack.c.bf16 %v77_v29, %v75_v28  ;;  %v82_v35 = vld [vmem:[#allocation8 + $0x38] sm:$0xff]  ;;  %v79_v36 = vld [vmem:[#allocation8 + $0x20] sm:$0xff]  ;;  %v81_v37 = vld [vmem:[#allocation8 + $0x30] sm:$0xff]  ;;  %280 = vadd.xlane.f32.xlu0 %v279_v24  ;;  %v282_v38 = vadd.f32 %v272_v20, %v271_v19  ;;  %p812_p5 = por %p811_p4, %p810_p3 }
  0x2d   :  { %v308_v40 = vmul.f32 %v77_v29, %v77_v29  ;;  %v84_v41 = vld [vmem:[#allocation8 + $0x48] sm:$0xff]  ;;  %v86_v42 = vld [vmem:[#allocation8 + $0x58] sm:$0xff]  ;;  %v635_v44 = vpack.c.bf16 %v82_v35, %v80_v30  ;;  %v311_v45 = vmul.f32 %v80_v30, %v80_v30  ;;  %v313_v46 = vmul.f32 %v82_v35, %v82_v35  ;;  %v83_v51 = vld [vmem:[#allocation8 + $0x40] sm:$0xff] }
  0x2e   :  { %632 = vmatprep.subr.bf16.mxu0 %v631_v27  ;;  %v407_v43 = vadd.f32 %v309_v33, %v307_v32  ;;  %v637_v48 = vpack.c.bf16 %v81_v37, %v79_v36  ;;  %v310_v49 = vmul.f32 %v79_v36, %v79_v36  ;;  %v312_v50 = vmul.f32 %v81_v37, %v81_v37  ;;  %v85_v52 = vld [vmem:[#allocation8 + $0x50] sm:$0xff]  ;;  %v88_v56 = vld [vmem:[#allocation8 + $0x68] sm:$0xff]  ;;  %v90_v57 = vld [vmem:[#allocation8 + $0x78] sm:$0xff]  ;;  %p813_p6 = pnand %p812_p5, %p806_p2 }
  0x2f   :  { %634 = vmatpush1.bf16.msra.mxu0 %v633_v34  ;;  %v370_v47 = vadd.f32 %v308_v40, %v306_v39  ;;  %695 = vmatprep.subr.bf16.mxu1 %v631_v27  ;;  %v639_v54 = vpack.c.bf16 %v86_v42, %v84_v41  ;;  %v315_v55 = vmul.f32 %v84_v41, %v84_v41  ;;  %v87_v8 = vld [vmem:[#allocation8 + $0x60] sm:$0xff]  ;;  %v89_v9 = vld [vmem:[#allocation8 + $0x70] sm:$0xff]  ;;  %v92_v13 = vld [vmem:[#allocation8 + $0x88] sm:$0xff] }
  0x30   :  { %289 = vadd.xlane.f32.xlu1 %v288_v25  ;;  %636 = vmatprep.subr.bf16.mxu0 %v635_v44  ;;  %v408_v53 = vadd.f32 %v407_v43, %v311_v45  ;;  %v291_v58 = vadd.f32 %v278_v31, %v277_v26  ;;  %v314_v60 = vmul.f32 %v83_v51, %v83_v51  ;;  %v94_v14 = vld [vmem:[#allocation8 + $0x98] sm:$0xff]  ;;  %v91_v27 = vld [vmem:[#allocation8 + $0x80] sm:$0xff]  ;;  %v93_v28 = vld [vmem:[#allocation8 + $0x90] sm:$0xff] }
  0x31   :  { %283 = vadd.xlane.f32.xlu0 %v282_v38  ;;  %v371_v59 = vadd.f32 %v370_v47, %v310_v49  ;;  %v317_v62 = vmul.f32 %v86_v42, %v86_v42  ;;  %v641_v63 = vpack.c.bf16 %v85_v52, %v83_v51  ;;  %711 = vmatpush1.bf16.msra.mxu1 %v633_v34  ;;  %v96_v31 = vld [vmem:[#allocation8 + $0xa8] sm:$0xff]  ;;  %v98_v32 = vld [vmem:[#allocation8 + $0xb8] sm:$0xff]  ;;  %v95_v41 = vld [vmem:[#allocation8 + $0xa0] sm:$0xff] }
  0x32   :  { %v409_v61 = vadd.f32 %v408_v53, %v313_v46  ;;  %v316_v6 = vmul.f32 %v85_v52, %v85_v52  ;;  %v643_v7 = vpack.c.bf16 %v90_v57, %v88_v56  ;;  %v319_v12 = vmul.f32 %v88_v56, %v88_v56  ;;  %696 = vmatprep.subr.bf16.mxu1 %v635_v44  ;;  %v97_v42 = vld [vmem:[#allocation8 + $0xb0] sm:$0xff]  ;;  %v100_v45 = vld [vmem:[#allocation8 + $0xc8] sm:$0xff]  ;;  %v102_v46 = vld [vmem:[#allocation8 + $0xd8] sm:$0xff] }
  0x33   :  { %638 = vmatpush1.bf16.msra.mxu0 %v637_v48  ;;  %v372_v1 = vadd.f32 %v371_v59, %v312_v50  ;;  %v318_v19 = vmul.f32 %v87_v8, %v87_v8  ;;  %v321_v22 = vmul.f32 %v90_v57, %v90_v57  ;;  %v645_v23 = vpack.c.bf16 %v89_v9, %v87_v8  ;;  %v101_v56 = vld [vmem:[#allocation8 + $0xd0] sm:$0xff]  ;;  %v104_v59 = vld [vmem:[#allocation8 + $0xe8] sm:$0xff] }
  0x34   :  { %640 = vmatprep.subr.bf16.mxu0 %v639_v54  ;;  %v410_v11 = vadd.f32 %v409_v61, %v315_v55  ;;  %v320_v25 = vmul.f32 %v89_v9, %v89_v9  ;;  %v647_v26 = vpack.c.bf16 %v94_v14, %v92_v13  ;;  %v323_v30 = vmul.f32 %v92_v13, %v92_v13  ;;  %v99_v55 = vld [vmem:[#allocation8 + $0xc0] sm:$0xff] }
  0x35   :  { %292 = vadd.xlane.f32.xlu0 %v291_v58  ;;  %v373_v18 = vadd.f32 %v372_v1, %v314_v60  ;;  %712 = vmatpush1.bf16.msra.mxu1 %v637_v48  ;;  %v322_v34 = vmul.f32 %v91_v27, %v91_v27  ;;  %v325_v36 = vmul.f32 %v94_v14, %v94_v14  ;;  %v106_v60 = vld [vmem:[#allocation8 + $0xf8] sm:$0xff]  ;;  %v268_v2 = vld [vmem:[#allocation3 + $0x20] sm:$0xff] }
  0x36   :  { %v411_v20 = vadd.f32 %v410_v11, %v317_v62  ;;  %697 = vmatprep.subr.bf16.mxu1 %v639_v54  ;;  %v649_v37 = vpack.c.bf16 %v93_v28, %v91_v27  ;;  %v324_v39 = vmul.f32 %v93_v28, %v93_v28  ;;  %v651_v40 = vpack.c.bf16 %v98_v32, %v96_v31  ;;  %v103_v11 = vld [vmem:[#allocation8 + $0xe0] sm:$0xff] }
  0x37   :  { %642 = vmatpush1.bf16.msra.mxu0 %v641_v63  ;;  %v374_v24 = vadd.f32 %v373_v18, %v316_v6  ;;  %v327_v44 = vmul.f32 %v96_v31, %v96_v31  ;;  %v326_v48 = vmul.f32 %v95_v41, %v95_v41  ;;  %v329_v50 = vmul.f32 %v98_v32, %v98_v32  ;;  %v108_v18 = vld [vmem:[#allocation8 + $0x108] sm:$0xff] }
  0x38   :  { %644 = vmatprep.subr.bf16.mxu0 %v643_v7  ;;  %v412_v29 = vadd.f32 %v411_v20, %v319_v12  ;;  %v653_v51 = vpack.c.bf16 %v97_v42, %v95_v41  ;;  %v328_v53 = vmul.f32 %v97_v42, %v97_v42  ;;  %v655_v54 = vpack.c.bf16 %v102_v46, %v100_v45  ;;  %v105_v12 = vld [vmem:[#allocation8 + $0xf0] sm:$0xff] }
  0x39   :  { %v375_v33 = vadd.f32 %v374_v24, %v318_v19  ;;  %713 = vmatpush1.bf16.msra.mxu1 %v641_v63  ;;  %v331_v58 = vmul.f32 %v100_v45, %v100_v45  ;;  %v330_v62 = vmul.f32 %v99_v55, %v99_v55  ;;  %v333_v1 = vmul.f32 %v102_v46, %v102_v46  ;;  %v110_v19 = vld [vmem:[#allocation8 + $0x118] sm:$0xff]  ;;  %v113_v45 = vld [vmem:[#allocation8 + $0x130] sm:$0xff] }
  0x3a   :  { %v413_v35 = vadd.f32 %v412_v29, %v321_v22  ;;  %698 = vmatprep.subr.bf16.mxu1 %v643_v7  ;;  %v657_v6 = vpack.c.bf16 %v101_v56, %v99_v55  ;;  %v332_v8 = vmul.f32 %v101_v56, %v101_v56  ;;  %v659_v9 = vpack.c.bf16 %v106_v60, %v104_v59  ;;  %v107_v29 = vld [vmem:[#allocation8 + $0x100] sm:$0xff] }
  0x3b   :  { %646 = vmatpush1.bf16.msra.mxu0 %v645_v23  ;;  %v376_v38 = vadd.f32 %v375_v33, %v320_v25  ;;  %v335_v14 = vmul.f32 %v104_v59, %v104_v59  ;;  %v334_v22 = vmul.f32 %v103_v11, %v103_v11  ;;  %v337_v24 = vmul.f32 %v106_v60, %v106_v60  ;;  %v112_v33 = vld [vmem:[#allocation8 + $0x128] sm:$0xff]  ;;  %v117_v59 = vld [vmem:[#allocation8 + $0x150] sm:$0xff] }
  0x3c   :  { %648 = vmatprep.subr.bf16.mxu0 %v647_v26  ;;  %v414_v43 = vadd.f32 %v413_v35, %v323_v30  ;;  %v661_v25 = vpack.c.bf16 %v105_v12, %v103_v11  ;;  %v336_v27 = vmul.f32 %v105_v12, %v105_v12  ;;  %v663_v28 = vpack.c.bf16 %v110_v19, %v108_v18  ;;  %v109_v30 = vld [vmem:[#allocation8 + $0x110] sm:$0xff] }
  0x3d   :  { %v377_v47 = vadd.f32 %v376_v38, %v322_v34  ;;  %714 = vmatpush1.bf16.msra.mxu1 %v645_v23  ;;  %v339_v32 = vmul.f32 %v108_v18, %v108_v18  ;;  %v114_v34 = vld [vmem:[#allocation8 + $0x138] sm:$0xff]  ;;  %v838_v35 = vmov 0   ;;  %v340_v42 = vmul.f32 %v109_v30, %v109_v30  ;;  %v121_v18 = vld [vmem:[#allocation8 + $0x170] sm:$0xff] }
  0x3e   :  { %v415_v49 = vadd.f32 %v414_v43, %v325_v36  ;;  %699 = vmatprep.subr.bf16.mxu1 %v647_v26  ;;  %735 = vset.pattern.permute.xlu1 %v838_v35  ;;  %v667_v43 = vpack.c.bf16 %v114_v34, %v112_v33  ;;  %v344_v56 = vmul.f32 %v113_v45, %v113_v45 }
  0x3f   :  { %650 = vmatpush1.bf16.msra.mxu0 %v649_v37  ;;  %v378_v52 = vadd.f32 %v377_v47, %v324_v39  ;;  %736 = vset.pattern.permute.xlu0 %v838_v35  ;;  %v341_v39 = vmul.f32 %v110_v19, %v110_v19  ;;  %v343_v47 = vmul.f32 %v112_v33, %v112_v33  ;;  %v125_v33 = vld [vmem:[#allocation8 + $0x190] sm:$0xff] }
  0x40   :  { %652 = vmatprep.subr.bf16.mxu0 %v651_v40  ;;  %v416_v57 = vadd.f32 %v415_v49, %v327_v44  ;;  %v111_v44 = vld [vmem:[#allocation8 + $0x120] sm:$0xff]  ;;  %v118_v49 = vld [vmem:[#allocation8 + $0x158] sm:$0xff]  ;;  %v348_v12 = vmul.f32 %v117_v59, %v117_v59 }
  0x41   :  { %v379_v61 = vadd.f32 %v378_v52, %v326_v48  ;;  %715 = vmatpush1.bf16.msra.mxu1 %v649_v37  ;;  %v338_v37 = vmul.f32 %v107_v29, %v107_v29  ;;  %v116_v48 = vld [vmem:[#allocation8 + $0x148] sm:$0xff] }
  0x42   :  { %v417_v63 = vadd.f32 %v416_v57, %v329_v50  ;;  %700 = vmatprep.subr.bf16.mxu1 %v651_v40  ;;  %v665_v40 = vpack.c.bf16 %v109_v30, %v107_v29  ;;  %v671_v57 = vpack.c.bf16 %v118_v49, %v116_v48  ;;  %v352_v30 = vmul.f32 %v121_v18, %v121_v18 }
  0x43   :  { %654 = vmatpush1.bf16.msra.mxu0 %v653_v51  ;;  %v380_v7 = vadd.f32 %v379_v61, %v328_v53  ;;  %v345_v53 = vmul.f32 %v114_v34, %v114_v34  ;;  %v347_v61 = vmul.f32 %v116_v48, %v116_v48 }
  0x44   :  { %656 = vmatprep.subr.bf16.mxu0 %v655_v54  ;;  %v418_v13 = vadd.f32 %v417_v63, %v331_v58  ;;  %v115_v58 = vld [vmem:[#allocation8 + $0x140] sm:$0xff]  ;;  %v122_v63 = vld [vmem:[#allocation8 + $0x178] sm:$0xff] }
  0x45   :  { %v381_v20 = vadd.f32 %v380_v7, %v330_v62  ;;  %716 = vmatpush1.bf16.msra.mxu1 %v653_v51  ;;  %v342_v51 = vmul.f32 %v111_v44, %v111_v44  ;;  %v120_v62 = vld [vmem:[#allocation8 + $0x168] sm:$0xff] }
  0x46   :  { %v419_v23 = vadd.f32 %v418_v13, %v333_v1  ;;  %701 = vmatprep.subr.bf16.mxu1 %v655_v54  ;;  %v669_v54 = vpack.c.bf16 %v113_v45, %v111_v44  ;;  %v675_v13 = vpack.c.bf16 %v122_v63, %v120_v62  ;;  %v356_v44 = vmul.f32 %v125_v33, %v125_v33 }
  0x47   :  { %658 = vmatpush1.bf16.msra.mxu0 %v657_v6  ;;  %v382_v26 = vadd.f32 %v381_v20, %v332_v8  ;;  %v349_v8 = vmul.f32 %v118_v49, %v118_v49  ;;  %v351_v20 = vmul.f32 %v120_v62, %v120_v62 }
  0x48   :  { %660 = vmatprep.subr.bf16.mxu0 %v659_v9  ;;  %v420_v31 = vadd.f32 %v419_v23, %v335_v14  ;;  %v119_v14 = vld [vmem:[#allocation8 + $0x160] sm:$0xff]  ;;  %v126_v23 = vld [vmem:[#allocation8 + $0x198] sm:$0xff] }
  0x49   :  { %v383_v36 = vadd.f32 %v382_v26, %v334_v22  ;;  %717 = vmatpush1.bf16.msra.mxu1 %v657_v6  ;;  %v346_v6 = vmul.f32 %v115_v58, %v115_v58  ;;  %v124_v22 = vld [vmem:[#allocation8 + $0x188] sm:$0xff] }
  0x4a   :  { %v421_v38 = vadd.f32 %v420_v31, %v337_v24  ;;  %702 = vmatprep.subr.bf16.mxu1 %v659_v9  ;;  %v673_v9 = vpack.c.bf16 %v117_v59, %v115_v58  ;;  %v679_v31 = vpack.c.bf16 %v126_v23, %v124_v22  ;;  %v355_v35 = vmul.f32 %v124_v22, %v124_v22 }
  0x4b   :  { %662 = vmatpush1.bf16.msra.mxu0 %v661_v25  ;;  %v384_v41 = vadd.f32 %v383_v36, %v336_v27  ;;  %v353_v27 = vmul.f32 %v122_v63, %v122_v63  ;;  %v128_v36 = vld [vmem:[#allocation8 + $0x1a8] sm:$0xff] }
  0x4c   :  { %664 = vmatprep.subr.bf16.mxu0 %v663_v28  ;;  %v422_v46 = vadd.f32 %v421_v38, %v339_v32  ;;  %v123_v32 = vld [vmem:[#allocation8 + $0x180] sm:$0xff]  ;;  %v359_v49 = vmul.f32 %v128_v36, %v128_v36 }
  0x4d   :  { %v385_v50 = vadd.f32 %v384_v41, %v338_v37  ;;  %718 = vmatpush1.bf16.msra.mxu1 %v661_v25  ;;  %v350_v25 = vmul.f32 %v119_v14, %v119_v14  ;;  %v130_v37 = vld [vmem:[#allocation8 + $0x1b8] sm:$0xff]  ;;  %v357_v41 = vmul.f32 %v126_v23, %v126_v23 }
  0x4e   :  { %v423_v52 = vadd.f32 %v422_v46, %v341_v39  ;;  %703 = vmatprep.subr.bf16.mxu1 %v663_v28  ;;  %v677_v28 = vpack.c.bf16 %v121_v18, %v119_v14  ;;  %v354_v39 = vmul.f32 %v123_v32, %v123_v32  ;;  %v683_v45 = vpack.c.bf16 %v130_v37, %v128_v36  ;;  %v127_v46 = vld [vmem:[#allocation8 + $0x1a0] sm:$0xff] }
  0x4f   :  { %666 = vmatpush1.bf16.msra.mxu0 %v665_v40  ;;  %v386_v55 = vadd.f32 %v385_v50, %v340_v42  ;;  %v681_v42 = vpack.c.bf16 %v125_v33, %v123_v32  ;;  %v132_v50 = vld [vmem:[#allocation8 + $0x1c8] sm:$0xff] }
  0x50   :  { %668 = vmatprep.subr.bf16.mxu0 %v667_v43  ;;  %v424_v60 = vadd.f32 %v423_v52, %v343_v47  ;;  %v129_v47 = vld [vmem:[#allocation8 + $0x1b0] sm:$0xff]  ;;  %v363_v63 = vmul.f32 %v132_v50, %v132_v50 }
  0x51   :  { %v387_v1 = vadd.f32 %v386_v55, %v342_v51  ;;  %719 = vmatpush1.bf16.msra.mxu1 %v665_v40  ;;  %v134_v51 = vld [vmem:[#allocation8 + $0x1d8] sm:$0xff]  ;;  %v361_v55 = vmul.f32 %v130_v37, %v130_v37  ;;  %v360_v58 = vmul.f32 %v129_v47, %v129_v47 }
  0x52   :  { %v425_v7 = vadd.f32 %v424_v60, %v345_v53  ;;  %704 = vmatprep.subr.bf16.mxu1 %v667_v43  ;;  %v358_v53 = vmul.f32 %v127_v46, %v127_v46  ;;  %v687_v59 = vpack.c.bf16 %v134_v51, %v132_v50  ;;  %v131_v60 = vld [vmem:[#allocation8 + $0x1c0] sm:$0xff] }
  0x53   :  { %670 = vmatpush1.bf16.msra.mxu0 %v669_v54  ;;  %v388_v11 = vadd.f32 %v387_v1, %v344_v56  ;;  %v685_v56 = vpack.c.bf16 %v129_v47, %v127_v46  ;;  %v136_v1 = vld [vmem:[#allocation8 + $0x1e8] sm:$0xff] }
  0x54   :  { %672 = vmatprep.subr.bf16.mxu0 %v671_v57  ;;  %v426_v19 = vadd.f32 %v425_v7, %v347_v61  ;;  %v133_v61 = vld [vmem:[#allocation8 + $0x1d0] sm:$0xff]  ;;  %v367_v23 = vmul.f32 %v136_v1, %v136_v1 }
  0x55   :  { %v389_v24 = vadd.f32 %v388_v11, %v346_v6  ;;  %720 = vmatpush1.bf16.msra.mxu1 %v669_v54  ;;  %v138_v6 = vld [vmem:[#allocation8 + $0x1f8] sm:$0xff]  ;;  %v365_v11 = vmul.f32 %v134_v51, %v134_v51  ;;  %v364_v14 = vmul.f32 %v133_v61, %v133_v61  ;;  %v264_v51 = vld [vmem:[#allocation3] sm:$0xff] }
  0x56   :  { %v427_v26 = vadd.f32 %v426_v19, %v349_v8  ;;  %705 = vmatprep.subr.bf16.mxu1 %v671_v57  ;;  %v362_v8 = vmul.f32 %v131_v60, %v131_v60  ;;  %v691_v18 = vpack.c.bf16 %v138_v6, %v136_v1  ;;  %v135_v19 = vld [vmem:[#allocation8 + $0x1e0] sm:$0xff] }
  0x57   :  { %674 = vmatpush1.bf16.msra.mxu0 %v673_v9  ;;  %v390_v29 = vadd.f32 %v389_v24, %v348_v12  ;;  %v689_v12 = vpack.c.bf16 %v133_v61, %v131_v60 }
  0x58   :  { %676 = vmatprep.subr.bf16.mxu0 %v675_v13  ;;  %v428_v34 = vadd.f32 %v427_v26, %v351_v20  ;;  %v137_v20 = vld [vmem:[#allocation8 + $0x1f0] sm:$0xff] }
  0x59   :  { %v391_v38 = vadd.f32 %v390_v29, %v350_v25  ;;  %721 = vmatpush1.bf16.msra.mxu1 %v673_v9  ;;  %v366_v25 = vmul.f32 %v135_v19, %v135_v19 }
  0x5a   :  { %v429_v40 = vadd.f32 %v428_v34, %v353_v27  ;;  %706 = vmatprep.subr.bf16.mxu1 %v675_v13  ;;  %v369_v27 = vmul.f32 %v138_v6, %v138_v6 }
  0x5b   :  { %678 = vmatpush1.bf16.msra.mxu0 %v677_v28  ;;  %v392_v43 = vadd.f32 %v391_v38, %v352_v30  ;;  %v368_v30 = vmul.f32 %v137_v20, %v137_v20 }
  0x5c   :  { %680 = vmatprep.subr.bf16.mxu0 %v679_v31  ;;  %v430_v48 = vadd.f32 %v429_v40, %v355_v35 }
  0x5d   :  { %v393_v52 = vadd.f32 %v392_v43, %v354_v39  ;;  %722 = vmatpush1.bf16.msra.mxu1 %v677_v28  ;;  %v693_v28 = vpack.c.bf16 %v137_v20, %v135_v19  ;;  %v839_v39 = vmov 1966171168  }
  0x5e   :  { %v431_v54 = vadd.f32 %v430_v48, %v357_v41  ;;  %707 = vmatprep.subr.bf16.mxu1 %v679_v31  ;;  %v448_v40 = vunpack.c.l.s4 %v839_v39 }
  0x5f   :  { %682 = vmatpush1.bf16.msra.mxu0 %v681_v42  ;;  %v394_v57 = vadd.f32 %v393_v52, %v356_v44 }
  0x60   :  { %684 = vmatprep.subr.bf16.mxu0 %v683_v45  ;;  %v432_v62 = vadd.f32 %v431_v54, %v359_v49 }
  0x61   :  { %v395_v7 = vadd.f32 %v394_v57, %v358_v53  ;;  %723 = vmatpush1.bf16.msra.mxu1 %v681_v42 }
  0x62   :  { %v433_v9 = vadd.f32 %v432_v62, %v361_v55  ;;  %708 = vmatprep.subr.bf16.mxu1 %v683_v45  ;;  %v937_v45 = vshrl.u32 %v60_v0, 7  ;;  %v266_v0 = vld [vmem:[#allocation3 + $0x10] sm:$0xff]  ;;  %v267_v55 = vld [vmem:[#allocation3 + $0x18] sm:$0xff] }
  0x63   :  { %686 = vmatpush1.bf16.msra.mxu0 %v685_v56  ;;  %v396_v13 = vadd.f32 %v395_v7, %v360_v58 }
  0x64   :  { %688 = vmatprep.subr.bf16.mxu0 %v687_v59  ;;  %v434_v22 = vadd.f32 %v433_v9, %v363_v63 }
  0x65   :  { %v397_v24 = vadd.f32 %v396_v13, %v362_v8  ;;  %724 = vmatpush1.bf16.msra.mxu1 %v685_v56 }
  0x66   :  { %v435_v26 = vadd.f32 %v434_v22, %v365_v11  ;;  %709 = vmatprep.subr.bf16.mxu1 %v687_v59 }
  0x67   :  { %690 = vmatpush1.bf16.msra.mxu0 %v689_v12  ;;  %v398_v29 = vadd.f32 %v397_v24, %v364_v14 }
  0x68   :  { %692 = vmatprep.subr.bf16.mxu0 %v691_v18  ;;  %v436_v31 = vadd.f32 %v435_v26, %v367_v23 }
  0x69   :  { %v399_v32 = vadd.f32 %v398_v29, %v366_v25  ;;  %725 = vmatpush1.bf16.msra.mxu1 %v689_v12 }
  0x6a   :  { %v437_v33 = vadd.f32 %v436_v31, %v369_v27  ;;  %710 = vmatprep.subr.bf16.mxu1 %v691_v18 }
  0x6b   :  { %694 = vmatpush1.bf16.msra.mxu0 %v693_v28  ;;  %v400_v34 = vadd.f32 %v399_v32, %v368_v30 }
  0x6c   :  { %v438_v35 = vrot.slane %v437_v33, 4 }
  0x6d   :  { %v401_v36 = vrot.slane %v400_v34, 4  ;;  %726 = vmatpush1.bf16.msra.mxu1 %v693_v28 }
  0x6e   :  { %214 = vmatmul.mubr.f32.vlgmr.msra.gmra.mrb[0].mxu0 %v902_v5  ;;  %v439_v37 = vadd.f32 %v438_v35, %v437_v33  ;;  %v449_v5 = vunpack.c.0.s8 %v448_v40 }
  0x6f   :  { %219 = vmatprep.mubr.f32.mxu0 %v916_v16  ;;  %v402_v38 = vadd.f32 %v401_v36, %v400_v34 }
  0x70   :  { %v440_v41 = vrot.slane %v439_v37, 2  ;;  %232 = vmatmul.mubr.f32.vlgmr.msra.gmra.mrb[0].mxu1 %v910_v10  ;;  %v452_v10 = vsub.s32 %v449_v5, %v937_v45 }
  0x71   :  { %v403_v42 = vrot.slane %v402_v38, 2  ;;  %237 = vmatprep.mubr.f32.mxu1 %v924_v21 }
  0x72   :  { %220 = vmatmul.mubr.f32.gmra.mrb[2].mxu0 %v914_v15  ;;  %v441_v43 = vadd.f32 %v440_v41, %v439_v37 }
  0x73   :  { %225 = vmatprep.mubr.f32.mxu0 %v900_v4  ;;  %v404_v44 = vadd.f32 %v403_v42, %v402_v38  ;;  %v305_v4 = vld [vmem:[#allocation4] sm:$0x3] }
  0x74   :  { %v442_v16 = vrot.slane %v441_v43, 1  ;;  %238 = vmatmul.mubr.f32.gmra.mrb[2].mxu1 %v918_v17  ;;  %v265_v17 = vld [vmem:[#allocation3 + $0x8] sm:$0xff] }
  0x75   :  { %v405_v46 = vrot.slane %v404_v44, 1 }
  0x76   :  { %226 = vmatmul.mubr.f32.gmra.mrb[4].mxu0 %v898_v3  ;;  %v443_v47 = vadd.f32 %v442_v16, %v441_v43 }
  0x77   :  { %v406_v15 = vadd.f32 %v405_v46, %v404_v44 }
  0x79   :  { %v446_v48 = vcombine.low %v406_v15, %v443_v47 }
  0x7b   :  { %v453_v49 = vrot.slane %v446_v48, %v452_v10 }
  0x7d   :  { %v460_v50 = vrot.slane %v453_v49, %v452_v10 }
  0x7f   :  { %v462_v21 = vadd.f32 %v460_v50, %v305_v4 }
  0x81   :  { %467 = vst.msk [vmem:[#allocation4] sm:$0x3] %vm892_vm1, %v462_v21 }
  0x88   :  { %v526_v47 = vld [vmem:[#allocation4] sm:$0x3] }
  0x89   :  { %vm529_vm12 = vcmp.eq.f32.partialorder %v526_v47, inf  ;;  %vm531_vm13 = vcmp.eq.f32.partialorder %v526_v47, 0.0 }
  0xb8   :  { %v287_v52 = vpop.xlane.xlu1 %286 }
  0xb9   :  { %v296_v53 = vadd.f32 %v287_v52, %v266_v0  ;;  %v281_v54 = vpop.xlane.xlu0 %280 }
  0xba   :  { %v294_v3 = vadd.f32 %v281_v54, %v264_v51  ;;  %v532_v51 = vand.u32 2147483648, %v526_v47 }
  0xbb   :  { %302 = vst.msk [vmem:[#allocation3 + $0x10] sm:$0xff] %vm54_vm0, %v296_v53 }
  0xbc   :  { %300 = vst.msk [vmem:[#allocation3] sm:$0xff] %vm54_vm0, %v294_v3 }
  0xbd   :  { %v290_v56 = vpop.xlane.xlu1 %289 }
  0xbe   :  { %v297_v57 = vadd.f32 %v290_v56, %v267_v55  ;;  %v284_v58 = vpop.xlane.xlu0 %283 }
  0xbf   :  { %v295_v59 = vadd.f32 %v284_v58, %v265_v17  ;;  %v589_v58 = vsub.s32 1, %v937_v45 }
  0xc0   :  { %303 = vst.msk [vmem:[#allocation3 + $0x18] sm:$0xff] %vm54_vm0, %v297_v57  ;;  %v585_v57 = vsub.s32 0, %v937_v45 }
  0xc1   :  { %301 = vst.msk [vmem:[#allocation3 + $0x8] sm:$0xff] %vm54_vm0, %v295_v59 }
  0xc2   :  { %v293_v60 = vpop.xlane.xlu0 %292  ;;  %v473_v62 = vld [vmem:[#allocation3 + $0x10] sm:$0xff] }
  0xc3   :  { %v298_v61 = vadd.f32 %v293_v60, %v268_v2  ;;  %v471_v63 = vld [vmem:[#allocation3] sm:$0xff]  ;;  %737 = vrsqrt.f32 %v473_v62  ;;  %vm492_vm2 = vcmp.eq.f32.partialorder %v473_v62, inf  ;;  %v495_v13 = vand.u32 2147483648, %v473_v62 }
  0xc4   :  { %739 = vrsqrt.f32 %v471_v63  ;;  %vm478_vm3 = vcmp.eq.f32.partialorder %v471_v63, inf  ;;  %v481_v14 = vand.u32 2147483648, %v471_v63  ;;  %vm494_vm4 = vcmp.eq.f32.partialorder %v473_v62, 0.0 }
  0xc5   :  { %304 = vst.msk [vmem:[#allocation3 + $0x20] sm:$0xff] %vm54_vm0, %v298_v61  ;;  %vm480_vm5 = vcmp.eq.f32.partialorder %v471_v63, 0.0 }
  0xc7   :  { %v474_v1 = vld [vmem:[#allocation3 + $0x18] sm:$0xff] }
  0xc8   :  { %v472_v6 = vld [vmem:[#allocation3 + $0x8] sm:$0xff]  ;;  %741 = vrsqrt.f32 %v474_v1  ;;  %vm499_vm6 = vcmp.eq.f32.partialorder %v474_v1, inf  ;;  %v502_v28 = vand.u32 2147483648, %v474_v1  ;;  %vm501_vm9 = vcmp.eq.f32.partialorder %v474_v1, 0.0 }
  0xc9   :  { %743 = vrsqrt.f32 %v472_v6  ;;  %vm485_vm7 = vcmp.eq.f32.partialorder %v472_v6, inf  ;;  %v488_v29 = vand.u32 2147483648, %v472_v6  ;;  %vm487_vm8 = vcmp.eq.f32.partialorder %v472_v6, 0.0 }
  0xcc   :  { %v475_v7 = vld [vmem:[#allocation3 + $0x20] sm:$0xff] }
  0xcd   :  { %745 = vrsqrt.f32 %v475_v7  ;;  %v738_v8 = vpop.eup %737  ;;  %vm506_vm10 = vcmp.eq.f32.partialorder %v475_v7, inf  ;;  %v509_v38 = vand.u32 2147483648, %v475_v7  ;;  %vm508_vm11 = vcmp.eq.f32.partialorder %v475_v7, 0.0 }
  0xce   :  { %v740_v9 = vpop.eup %739  ;;  %v491_v11 = vmul.f32 %v738_v8, %v473_v62 }
  0xcf   :  { %v477_v12 = vmul.f32 %v740_v9, %v471_v63 }
  0xd0   :  { %v493_v18 = vsel %vm492_vm2, %v473_v62, %v491_v11 }
  0xd1   :  { %v479_v20 = vsel %vm478_vm3, %v471_v63, %v477_v12  ;;  %v496_v22 = vsel %vm494_vm4, %v495_v13, %v493_v18 }
  0xd2   :  { %v742_v19 = vpop.eup %741  ;;  %v482_v24 = vsel %vm480_vm5, %v481_v14, %v479_v20  ;;  %v513_v30 = vadd.f32 1e-08, %v496_v22 }
  0xd3   :  { %v744_v23 = vpop.eup %743  ;;  %v498_v25 = vmul.f32 %v742_v19, %v474_v1  ;;  %v511_v26 = vadd.f32 1e-08, %v482_v24 }
  0xd4   :  { %v484_v27 = vmul.f32 %v744_v23, %v472_v6 }
  0xd5   :  { %v500_v31 = vsel %vm499_vm6, %v474_v1, %v498_v25  ;;  %747 = vrcp.f32 %v511_v26 }
  0xd6   :  { %v486_v32 = vsel %vm485_vm7, %v472_v6, %v484_v27  ;;  %v503_v35 = vsel %vm501_vm9, %v502_v28, %v500_v31  ;;  %749 = vrcp.f32 %v513_v30 }
  0xd7   :  { %v746_v33 = vpop.eup %745  ;;  %v489_v34 = vsel %vm487_vm8, %v488_v29, %v486_v32  ;;  %v514_v39 = vadd.f32 1e-08, %v503_v35 }
  0xd8   :  { %v512_v36 = vadd.f32 1e-08, %v489_v34  ;;  %v505_v37 = vmul.f32 %v746_v33, %v475_v7 }
  0xda   :  { %751 = vrcp.f32 %v512_v36  ;;  %v507_v40 = vsel %vm506_vm10, %v475_v7, %v505_v37 }
  0xdb   :  { %v510_v41 = vsel %vm508_vm11, %v509_v38, %v507_v40  ;;  %753 = vrcp.f32 %v514_v39 }
  0xdc   :  { %v515_v42 = vadd.f32 1e-08, %v510_v41 }
  0xde   :  { %755 = vrcp.f32 %v515_v42 }
  0xdf   :  { %v748_v43 = vpop.eup %747  ;;  %757 = vrsqrt.f32 %v526_v47 }
  0xe0   :  { %549 = vperm.xlu1 %735, %v748_v43   ;;  %v750_v44 = vpop.eup %749 }
  0xe4   :  { %v752_v5 = vpop.eup %751  ;;  %559 = vperm.xlu1 %735, %v750_v44  }
  0xe5   :  { %554 = vperm.xlu0 %736, %v752_v5   ;;  %v754_v16 = vpop.eup %753 }
  0xe8   :  { %564 = vperm.xlu1 %735, %v754_v16   ;;  %v756_v46 = vpop.eup %755 }
  0xe9   :  { %v758_v10 = vpop.eup %757 }
  0xea   :  { %v528_v49 = vmul.f32 %v758_v10, %v526_v47 }
  0xec   :  { %569 = vperm.xlu1 %735, %v756_v46   ;;  %v530_v52 = vsel %vm529_vm12, %v526_v47, %v528_v49 }
  0xed   :  { %v533_v17 = vsel %vm531_vm13, %v532_v51, %v530_v52 }
  0xee   :  { %v534_v56 = vadd.f32 1e-08, %v533_v17 }
  0xf0   :  { %759 = vrcp.f32 %v534_v56 }
  0xfa   :  { %v760_v59 = vpop.eup %759 }
  0xfb   :  { %v586_v2 = vrot.slane %v760_v59, %v585_v57  ;;  %v590_v60 = vrot.slane %v760_v59, %v589_v58 }
 0x141   :  { %v215_v15 = vpop.f32.mrb[0].mxu0 }
 0x142   :  { %v217_v48 = vpop.f32.mrb[1].mxu0 }
 0x143   :  { %v233_v50 = vpop.f32.mrb[0].mxu1 }
 0x144   :  { %v235_v0 = vpop.f32.mrb[1].mxu1 }
 0x145   :  { %v221_v4 = vpop.f32.mrb[2].mxu0 }
 0x146   :  { %v223_v21 = vpop.f32.mrb[3].mxu0 }
 0x147   :  { %v239_v54 = vpop.f32.mrb[2].mxu1 }
 0x148   :  { %v241_v55 = vpop.f32.mrb[3].mxu1 }
 0x149   :  { %v227_v53 = vpop.f32.mrb[4].mxu0 }
 0x14a   :  { %v229_v3 = vpop.f32.mrb[5].mxu0 }
 0x15f   :  { %v550_v61 = vpop.permute.xlu1 %549 }
 0x160   :  { %v572_v62 = vmul.f32 %v550_v61, %v215_v15  ;;  %v573_v63 = vmul.f32 %v550_v61, %v217_v48 }
 0x162   :  { %v593_v1 = vmul.f32 %v586_v2, %v572_v62  ;;  %v594_v6 = vmul.f32 %v590_v60, %v573_v63 }
 0x163   :  { %v560_v8 = vpop.permute.xlu1 %559 }
 0x164   :  { %v555_v7 = vpop.permute.xlu0 %554  ;;  %603 = vst [vmem:[#allocation10] sm:$0xff] %v593_v1  ;;  %604 = vst [vmem:[#allocation10 + $0x8] sm:$0xff] %v594_v6  ;;  %v576_v12 = vmul.f32 %v560_v8, %v227_v53  ;;  %v577_v13 = vmul.f32 %v560_v8, %v229_v3 }
 0x165   :  { %v574_v9 = vmul.f32 %v555_v7, %v221_v4  ;;  %v575_v11 = vmul.f32 %v555_v7, %v223_v21 }
 0x166   :  { %v597_v19 = vmul.f32 %v586_v2, %v576_v12  ;;  %v598_v45 = vmul.f32 %v590_v60, %v577_v13 }
 0x167   :  { %v595_v14 = vmul.f32 %v586_v2, %v574_v9  ;;  %v596_v18 = vmul.f32 %v590_v60, %v575_v11  ;;  %v565_v20 = vpop.permute.xlu1 %564 }
 0x168   :  { %607 = vst [vmem:[#allocation10 + $0x20] sm:$0xff] %v597_v19  ;;  %608 = vst [vmem:[#allocation10 + $0x28] sm:$0xff] %v598_v45  ;;  %v578_v22 = vmul.f32 %v565_v20, %v233_v50  ;;  %v579_v23 = vmul.f32 %v565_v20, %v235_v0 }
 0x169   :  { %605 = vst [vmem:[#allocation10 + $0x10] sm:$0xff] %v595_v14  ;;  %606 = vst [vmem:[#allocation10 + $0x18] sm:$0xff] %v596_v18 }
 0x16a   :  { %v599_v24 = vmul.f32 %v586_v2, %v578_v22  ;;  %v600_v25 = vmul.f32 %v590_v60, %v579_v23 }
 0x16b   :  { %v570_v26 = vpop.permute.xlu1 %569 }
 0x16c   :  { %609 = vst [vmem:[#allocation10 + $0x30] sm:$0xff] %v599_v24  ;;  %610 = vst [vmem:[#allocation10 + $0x38] sm:$0xff] %v600_v25  ;;  %v580_v27 = vmul.f32 %v570_v26, %v239_v54  ;;  %v581_v28 = vmul.f32 %v570_v26, %v241_v55 }
 0x16e   :  { %v601_v29 = vmul.f32 %v586_v2, %v580_v27  ;;  %v602_v30 = vmul.f32 %v590_v60, %v581_v28 }
 0x170   :  { %611 = vst [vmem:[#allocation10 + $0x40] sm:$0xff] %v601_v29  ;;  %612 = vst [vmem:[#allocation10 + $0x48] sm:$0xff] %v602_v30 }
 0x171   :  { %816 = shalt.err (!%p813_p6)
}
 0x172   :  { %s817_s10 = scalar_lea.hbm %s968_s2, 1280 }
 0x173   :  { %p818_p7 = scmp.ne.s32.totalorder %s968_s2, %s817_s10  ;;  %p821_p8 = scmp.lt.u32.totalorder %s817_s10, %s968_s2 }
 0x175   :  { %p823_p9 = pnand %p821_p8, %p818_p7 }
 0x177   :  { %826 = shalt.err (!%p823_p9)
}
 0x178   :  { %624 = dma.vmem_to_hbm [thread:$0]  %s619_s6, 1280, %s968_s2, [#allocation7], %s834_s19, %s834_s19, %s835_s20  }
 0x179   :  { %831 = dma.done.wait [#allocation7], 1280  }
 0x17a   :  { %832 = vsyncadd [#allocation7], 4294966016 }
 0x17b   :  { %628 = vsyncpa [#allocation6], 1 }
 0x17c   :  { %629 = vsyncpa [#allocation9], 1 }
 0x17d   :  { %630 = vsyncpa [#allocation7], 1 }

</bundles_post_ra>
